<compile_context>
chip_gen: v7x
topology: tpu7x:2x2x1
jax: 0.10.0
libtpu: 0.0.40
codegen_flags: <defaults>
</compile_context>

<pallas_src>
import jax
import jax.numpy as jnp
from jax.experimental import pallas as pl
from jax.experimental.pallas import tpu as pltpu

LANE = 128
ROW_GRAN = 32  # row granularity: covers f32 (8,128), bf16 (16,128), int8 (32,128) tiles


def _ssigmoid_kernel(a_ref, b_ref, z_ref, o_ref):
    a = a_ref[0]                       # scalar scale  (SMEM)
    b = b_ref[0]                       # scalar shift  (SMEM)
    z = z_ref[...].astype(jnp.float32)
    y = (z - b) * a
    # Sign-stable, single-exp sigmoid:
    #   t = exp(-|y|) in (0, 1];   sigmoid(y) = 1/(1+t) if y >= 0 else t/(1+t)
    # One EUP exp + one EUP approx-reciprocal (plus a cheap VPU Newton step)
    # instead of exp + exact-divide microsequences.
    t = jnp.exp(-jnp.abs(y))
    denom = 1.0 + t                    # in (1, 2]: finite and well conditioned
    r = pl.reciprocal(denom, approx=True)
    r = r * (2.0 - denom * r)          # one Newton-Raphson step -> ~f32-exact 1/denom
    sig = jnp.where(y >= 0.0, r, t * r)
    o_ref[...] = sig.astype(o_ref.dtype)


def _choose_tile_rows(rows: int, itemsize: int) -> int:
    # ~2 MiB per pipelined buffer (2 in-flight input bufs + 2 output bufs ~= 8 MiB
    # total): big enough to amortize the ~0.35 us/grid-step overhead, small enough
    # for every TPU generation's scoped VMEM without spilling.
    budget_rows = max(ROW_GRAN, (2 * 1024 * 1024) // (LANE * itemsize))
    if rows <= budget_rows:
        return rows                    # single block covering the whole slab
    # Multi-step grid (keeps both v7x TensorCores streaming), row-granularity
    # aligned so packed sub-32-bit dtypes also tile cleanly. No degenerate
    # divisor search: the ragged last block is masked by Pallas.
    t = min(budget_rows, pl.cdiv(rows, 2))
    return max(ROW_GRAN, (t // ROW_GRAN) * ROW_GRAN)


def shifted_scaled_sigmoid(z: jax.Array, a=1.0, b=0.0) -> jax.Array:
    """sigmoid(a * (z - b)) elementwise, matching ShiftedScaledSigmoid.forward."""
    orig_shape = z.shape
    orig_dtype = z.dtype

    a_arr = jnp.asarray(a, dtype=jnp.float32).reshape((1,))
    b_arr = jnp.asarray(b, dtype=jnp.float32).reshape((1,))

    flat = z.reshape(-1)
    n = flat.shape[0]

    # Pad only when the element count isn't lane-aligned (pad/slice are extra
    # HBM passes, so the common aligned case is a free view-reshape).
    padded_n = pl.cdiv(n, LANE) * LANE
    if padded_n != n:
        flat = jnp.pad(flat, (0, padded_n - n))
    rows = padded_n // LANE
    slab = flat.reshape(rows, LANE)

    tile_rows = _choose_tile_rows(rows, jnp.dtype(orig_dtype).itemsize)
    grid = (pl.cdiv(rows, tile_rows),)   # ragged last block handled by Pallas masking

    out = pl.pallas_call(
        _ssigmoid_kernel,
        out_shape=jax.ShapeDtypeStruct((rows, LANE), orig_dtype),
        grid_spec=pltpu.PrefetchScalarGridSpec(
            num_scalar_prefetch=0,
            grid=grid,
            in_specs=[
                pl.BlockSpec(memory_space=pltpu.MemorySpace.SMEM),    # a (scalar)
                pl.BlockSpec(memory_space=pltpu.MemorySpace.SMEM),    # b (scalar)
                pl.BlockSpec((tile_rows, LANE), lambda i: (i, 0)),    # z slab tile
            ],
            out_specs=pl.BlockSpec((tile_rows, LANE), lambda i: (i, 0)),
        ),
        compiler_params=pltpu.CompilerParams(
            dimension_semantics=("parallel",),       # shards grid across v7x's 2 TCs
            vmem_limit_bytes=32 * 1024 * 1024,
        ),
    )(a_arr, b_arr, slab)

    if padded_n != n:
        return out.reshape(-1)[:n].reshape(orig_shape)
    return out.reshape(orig_shape)


def shifted_scaled_sigmoid_ref(z, a=1.0, b=0.0):
    # Pure-JAX reference mirroring the PyTorch forward exactly.
    return jax.nn.sigmoid(a * (z - b))


# TODO(synk): the PyTorch `inplace=True` path has no JAX equivalent (functional
# arrays); only the out-of-place forward is implemented.

if __name__ == "__main__":
    key = jax.random.PRNGKey(0)
    x = jax.random.normal(key, (2, 4, 16, 16), dtype=jnp.float32)

    # Default parameters (a=1.0, b=0.0).
    y0 = jax.block_until_ready(shifted_scaled_sigmoid(x))
    assert y0.shape == x.shape and y0.dtype == x.dtype
    assert jnp.allclose(y0, shifted_scaled_sigmoid_ref(x), atol=1e-5, rtol=1e-5), \
        "mismatch vs reference (a=1, b=0)"

    # Docstring example parameters (a=2.0, b=0.5).
    y1 = jax.block_until_ready(shifted_scaled_sigmoid(x, a=2.0, b=0.5))
    assert jnp.allclose(y1, shifted_scaled_sigmoid_ref(x, a=2.0, b=0.5),
                        atol=1e-5, rtol=1e-5), "mismatch vs reference (a=2, b=0.5)"

    print("KERNEL_OK")
</pallas_src>

<mosaic_0001>
module attributes {stable_mosaic.version = 11 : i64} {
  func.func @_ssigmoid_kernel(%arg0: i32, %arg1: memref<1xf32, #tpu.memory_space<smem>>, %arg2: memref<1xf32, #tpu.memory_space<smem>>, %arg3: memref<16x128xf32, #tpu.memory_space<vmem>>, %arg4: memref<16x128xf32, #tpu.memory_space<vmem>>) attributes {dimension_semantics = [#tpu.dimension_semantics<parallel>], iteration_bounds = array<i64: 1>, scalar_prefetch = 0 : i64, scratch_operands = 0 : i64, tpu.core_type = #tpu.core_type<tc>, window_params = [{transform_indices = @transform_0, window_bounds = array<i64: 1>}, {transform_indices = @transform_1, window_bounds = array<i64: 1>}, {transform_indices = @transform_2, window_bounds = array<i64: 16, 128>}, {transform_indices = @transform_3, window_bounds = array<i64: 16, 128>}]} {
    %c0 = arith.constant 0 : index
    %0 = memref.load %arg1[%c0] : memref<1xf32, #tpu.memory_space<smem>>
    %c0_0 = arith.constant 0 : index
    %1 = memref.load %arg2[%c0_0] : memref<1xf32, #tpu.memory_space<smem>>
    %c0_1 = arith.constant 0 : index
    %c0_2 = arith.constant 0 : index
    %2 = vector.load %arg3[%c0_1, %c0_2] : memref<16x128xf32, #tpu.memory_space<vmem>>, vector<16x128xf32>
    %3 = vector.broadcast %1 : f32 to vector<16x128xf32>
    %4 = arith.subf %2, %3 : vector<16x128xf32>
    %5 = vector.broadcast %0 : f32 to vector<16x128xf32>
    %6 = arith.mulf %4, %5 : vector<16x128xf32>
    %7 = math.absf %6 : vector<16x128xf32>
    %cst = arith.constant 0.000000e+00 : f32
    %8 = vector.broadcast %cst : f32 to vector<16x128xf32>
    %9 = arith.subf %8, %7 : vector<16x128xf32>
    %10 = math.exp %9 : vector<16x128xf32>
    %cst_3 = arith.constant 1.000000e+00 : f32
    %11 = vector.broadcast %cst_3 : f32 to vector<16x128xf32>
    %12 = arith.addf %11, %10 : vector<16x128xf32>
    %13 = tpu.reciprocal %12 {approx = true} : vector<16x128xf32> -> vector<16x128xf32>
    %14 = arith.mulf %12, %13 : vector<16x128xf32>
    %cst_4 = arith.constant 2.000000e+00 : f32
    %15 = vector.broadcast %cst_4 : f32 to vector<16x128xf32>
    %16 = arith.subf %15, %14 : vector<16x128xf32>
    %17 = arith.mulf %13, %16 : vector<16x128xf32>
    %cst_5 = arith.constant 0.000000e+00 : f32
    %18 = vector.broadcast %cst_5 : f32 to vector<16x128xf32>
    %19 = arith.cmpf oge, %6, %18 : vector<16x128xf32>
    %20 = arith.mulf %10, %17 : vector<16x128xf32>
    %21 = arith.select %19, %17, %20 : vector<16x128xi1>, vector<16x128xf32>
    %c0_6 = arith.constant 0 : index
    %c0_7 = arith.constant 0 : index
    %22 = vector.load %arg4[%c0_6, %c0_7] : memref<16x128xf32, #tpu.memory_space<vmem>>, vector<16x128xf32>
    tpu.vector_store %arg4[%c0_6, %c0_7], %21 {strides = array<i32>} : memref<16x128xf32, #tpu.memory_space<vmem>>, vector<16x128xf32>,
    return
  }
  func.func @transform_0(%arg0: i32) -> i32 {
    %c0_i32 = arith.constant 0 : i32
    %c0_i32_0 = arith.constant 0 : i32
    return %c0_i32 : i32
  }
  func.func @transform_1(%arg0: i32) -> i32 {
    %c0_i32 = arith.constant 0 : i32
    %c0_i32_0 = arith.constant 0 : i32
    return %c0_i32 : i32
  }
  func.func @transform_2(%arg0: i32) -> (i32, i32) {
    %c0_i32 = arith.constant 0 : i32
    %c0_i32_0 = arith.constant 0 : i32
    return %arg0, %c0_i32 : i32, i32
  }
  func.func @transform_3(%arg0: i32) -> (i32, i32) {
    %c0_i32 = arith.constant 0 : i32
    %c0_i32_0 = arith.constant 0 : i32
    return %arg0, %c0_i32 : i32, i32
  }
}

</mosaic_0001>

<bundles_post_ra>
// kernel: tpu_custom_call.1
= control target key start
LH: loop header
LB: loop body
LE: loop exit
PB: predicated region body
PF: predicated region fallthrough
CT: control target
= control target key end

     0   :  { %10 = vsyncpa [#allocation5], 0  ;;  %s204_s0 = inlined_call_operand.<no memory space> [shape: f32[1], index: 0, kind: input, shape index: {}]   ;;  %s205_s1 = inlined_call_operand.<no memory space> [shape: f32[1], index: 1, kind: input, shape index: {}]   ;;  %s206_s2 = inlined_call_operand.hbm [shape: f32[16,128], index: 2, kind: input, shape index: {}]   ;;  %s207_s3 = inlined_call_operand.hbm [shape: f32[16,128], index: 3, kind: output, shape index: {}]  }
   0x1   :  { %11 = vsyncpa [#allocation6], 0  ;;  %s144_s12 = smov [#allocation4]   ;;  %s96_s16 = scalar_lea.hbm %s206_s2, 256 }
   0x2   :  { %s21_s13 = sshll.u32 %s144_s12, 4  ;;  %p97_p0 = scmp.ne.s32.totalorder %s206_s2, %s96_s16  ;;  %s22_s13 = int_to_ptr.vmem [resolvable:$true] %s21_s13 }
   0x3   :  { %p100_p1 = scmp.lt.u32.totalorder %s96_s16, %s206_s2 }
   0x5   :  { %p102_p2 = pnand %p100_p1, %p97_p0 }
   0x7   :  { %105 = shalt.err (!%p102_p2)
}
   0x8   :  { %s106_s21 = scalar_lea.vmem %s22_s13, 256  ;;  %p111_p4 = scmp.lt.s32.totalorder %s22_s13, %s22_s13 }
   0x9   :  { %p107_p3 = scmp.ne.s32.totalorder %s22_s13, %s106_s21  ;;  %p112_p5 = scmp.lt.s32.totalorder %s106_s21, %s106_s21 }
   0xb   :  { %p113_p6 = por %p112_p5, %p111_p4 }
   0xd   :  { %p114_p7 = pnand %p113_p6, %p107_p3 }
   0xf   :  { %117 = shalt.err (!%p114_p7)
}
  0x10   :  { %s145_s22 = smov 128   ;;  %s146_s23 = smov 8  }
  0x11   :  { %27 = dma.hbm_to_vmem [thread:$0]  %s206_s2, 256, %s22_s13, [#allocation5], %s145_s22, %s145_s22, %s146_s23  }
  0x12   :  { %140 = dma.done.wait [#allocation5], 256  }
  0x13   :  { %141 = vsyncadd [#allocation5], 4294967040  ;;  %v35_v0 = vstv %s205_s1  ;;  %v33_v1 = vld [vmem:[#allocation4] sm:$0xff]  ;;  %v38_v2 = vstv %s204_s0  ;;  %v34_v3 = vld [vmem:[#allocation4 + $0x8] sm:$0xff]  ;;  %s147_s0 = smov [#allocation7]  }
  0x14   :  { %v36_v4 = vsub.f32 %v33_v1, %v35_v0  ;;  %v37_v5 = vsub.f32 %v34_v3, %v35_v0  ;;  %s72_s1 = sshll.u32 %s147_s0, 4  ;;  %s73_s1 = int_to_ptr.vmem [resolvable:$true] %s72_s1 }
  0x15   :  { %s118_s2 = scalar_lea.vmem %s73_s1, 256  ;;  %p123_p9 = scmp.lt.s32.totalorder %s73_s1, %s73_s1 }
  0x16   :  { %v39_v6 = vmul.f32 %v38_v2, %v36_v4  ;;  %v40_v7 = vmul.f32 %v38_v2, %v37_v5  ;;  %p119_p8 = scmp.ne.s32.totalorder %s73_s1, %s118_s2  ;;  %p124_p10 = scmp.lt.s32.totalorder %s118_s2, %s118_s2 }
  0x18   :  { %v41_v8 = vand.u32 2147483647, %v39_v6  ;;  %v42_v9 = vand.u32 2147483647, %v40_v7  ;;  %vm59_vm0 = vcmp.ge.f32.partialorder %v39_v6, 0.0  ;;  %vm60_vm1 = vcmp.ge.f32.partialorder %v40_v7, 0.0  ;;  %p125_p11 = por %p124_p10, %p123_p9 }
  0x1a   :  { %v43_v10 = vsub.f32 0.0, %v41_v8  ;;  %v44_v11 = vsub.f32 0.0, %v42_v9  ;;  %p126_p12 = pnand %p125_p11, %p119_p8 }
  0x1c   :  { %v45_v12 = vmul.f32 1.442695, %v43_v10  ;;  %v47_v13 = vmul.f32 1.442695, %v44_v11 }
  0x1e   :  { %88 = vpow2.f32 %v45_v12 }
  0x1f   :  { %90 = vpow2.f32 %v47_v13 }
  0x28   :  { %v89_v14 = vpop.eup %88 }
  0x29   :  { %v91_v15 = vpop.eup %90  ;;  %v49_v16 = vadd.f32 1.0, %v89_v14 }
  0x2a   :  { %v50_v17 = vadd.f32 1.0, %v91_v15 }
  0x2b   :  { %92 = vrcp.f32 %v49_v16 }
  0x2c   :  { %94 = vrcp.f32 %v50_v17 }
  0x35   :  { %v93_v18 = vpop.eup %92 }
  0x36   :  { %v95_v19 = vpop.eup %94  ;;  %v53_v20 = vmul.f32 %v93_v18, %v49_v16 }
  0x37   :  { %v54_v21 = vmul.f32 %v95_v19, %v50_v17 }
  0x38   :  { %v55_v22 = vsub.f32 2.0, %v53_v20 }
  0x39   :  { %v56_v23 = vsub.f32 2.0, %v54_v21 }
  0x3a   :  { %v57_v24 = vmul.f32 %v93_v18, %v55_v22 }
  0x3b   :  { %v58_v25 = vmul.f32 %v95_v19, %v56_v23 }
  0x3c   :  { %v61_v26 = vmul.f32 %v89_v14, %v57_v24 }
  0x3d   :  { %v62_v27 = vmul.f32 %v91_v15, %v58_v25 }
  0x3e   :  { %v63_v28 = vsel %vm59_vm0, %v57_v24, %v61_v26 }
  0x3f   :  { %65 = vst [vmem:[#allocation7] sm:$0xff] %v63_v28  ;;  %v64_v29 = vsel %vm60_vm1, %v58_v25, %v62_v27 }
  0x40   :  { %66 = vst [vmem:[#allocation7 + $0x8] sm:$0xff] %v64_v29 }
  0x41   :  { %129 = shalt.err (!%p126_p12)
}
  0x42   :  { %s130_s5 = scalar_lea.hbm %s207_s3, 256 }
  0x43   :  { %p131_p13 = scmp.ne.s32.totalorder %s207_s3, %s130_s5  ;;  %p134_p0 = scmp.lt.u32.totalorder %s130_s5, %s207_s3 }
  0x45   :  { %p136_p1 = pnand %p134_p0, %p131_p13 }
  0x47   :  { %139 = shalt.err (!%p136_p1)
}
  0x48   :  { %78 = dma.vmem_to_hbm [thread:$0]  %s73_s1, 256, %s207_s3, [#allocation6], %s145_s22, %s145_s22, %s146_s23  }
  0x49   :  { %142 = dma.done.wait [#allocation6], 256  }
  0x4a   :  { %143 = vsyncadd [#allocation6], 4294967040 }
  0x4b   :  { %82 = vsyncpa [#allocation5], 1 }
  0x4c   :  { %83 = vsyncpa [#allocation6], 1 }

</bundles_post_ra>
